<compile_context>
chip_gen: v6e
topology: v6e:2x2x1
jax: 0.10.0
libtpu: 0.0.40
codegen_flags: <defaults>
</compile_context>

<pallas_src>
import math

import jax
import jax.numpy as jnp
import numpy as np
from jax.experimental import pallas as pl
from jax.experimental.pallas import tpu as pltpu

_VMEM_LIMIT_BYTES = 48 << 20   # < 64 MiB physical on v7x; raises 16/32 MiB scoped defaults
_STAGE2_BUF_BUDGET = 16 << 20  # 2x-in + 2x-out double buffers of the streaming add
_STAGE1_BUF_BUDGET = 12 << 20  # double-buffered (D, tn) dense-weight blocks


def _cdiv(a: int, b: int) -> int:
    return -(-a // b)


def _row_tile(n_rows: int, row_bytes: int, budget_bytes: int,
              cap: int = 1024, min_steps: int = 1) -> int:
    """8-aligned row tile: byte-budgeted, capped, balanced over >= min_steps grid steps."""
    if n_rows <= 8:
        return n_rows
    fit = max(8, (min(cap, budget_bytes // max(row_bytes, 1)) // 8) * 8)
    n_steps = max(min_steps, _cdiv(n_rows, fit))
    if n_steps <= 1:
        return n_rows
    return max(8, min(n_rows, _cdiv(_cdiv(n_rows, n_steps), 8) * 8))


def _lane_tile(d: int, col_bytes: int, budget_bytes: int) -> int:
    """128-aligned lane tile within a byte budget (full extent if it fits)."""
    t = budget_bytes // max(col_bytes, 1)
    if t >= d:
        return d
    return max(128, (t // 128) * 128)


# ---------------------------------------------------------------------------
# Stage 1: compute the (B_pad, 1, D) time embedding once.
# ---------------------------------------------------------------------------
def _time_emb_kernel(t_ref, w_ref, wd_ref, b_ref, out_ref, emb_scratch):
    half = w_ref.shape[1]

    # The sin/cos table is identical for every N tile -> fill the scratch once.
    @pl.when(pl.program_id(0) == 0)
    def _():
        # (B_pad, 1) * (1, half) outer product on the VPU (a K=1 matmul would
        # waste an MXU pass).  2*pi is pre-folded into w_ref in the wrapper.
        proj = t_ref[...] * w_ref[...]
        # Two aligned static-slice stores instead of a lane-crossing concat.
        emb_scratch[:, pl.ds(0, half)] = jnp.sin(proj)
        emb_scratch[:, pl.ds(half, half)] = jnp.cos(proj)

    out_ref[:, 0, :] = (
        jnp.dot(emb_scratch[...], wd_ref[...], preferred_element_type=jnp.float32)
        + b_ref[...]
    ).astype(out_ref.dtype)


def _time_embedding(t_pad, w_scaled, wd_t, bias, out_dtype, tn):
    b_pad = t_pad.shape[0]
    d = wd_t.shape[0]
    half = w_scaled.shape[1]
    return pl.pallas_call(
        _time_emb_kernel,
        out_shape=jax.ShapeDtypeStruct((b_pad, 1, d), out_dtype),
        grid=(pl.cdiv(d, tn),),
        in_specs=[
            pl.BlockSpec((b_pad, 1), lambda n: (0, 0)),
            pl.BlockSpec((1, half), lambda n: (0, 0)),
            pl.BlockSpec((d, tn), lambda n: (0, n)),
            pl.BlockSpec((1, tn), lambda n: (0, n)),
        ],
        out_specs=pl.BlockSpec((b_pad, 1, tn), lambda n: (0, 0, n)),
        scratch_shapes=[pltpu.VMEM((b_pad, d), jnp.float32)],
        compiler_params=pltpu.CompilerParams(
            # scratch filled at n == 0 must stay visible to all later tiles.
            dimension_semantics=("arbitrary",),
            vmem_limit_bytes=_VMEM_LIMIT_BYTES,
        ),
    )(t_pad, w_scaled, wd_t, bias)


# ---------------------------------------------------------------------------
# Stage 2: broadcast-add the embedding over x (pure HBM-bound streaming add).
# ---------------------------------------------------------------------------
def _add_kernel(x_ref, emb_ref, o_ref):
    # Plain jnp broadcast add; no in-loop broadcast_to.
    o_ref[...] = x_ref[...] + emb_ref[...]


def _broadcast_add_seq(x, emb3, ts):
    b, s, d = x.shape
    # NOTE: callers that can donate x could add input_output_aliases={0: 0}
    # here to avoid the second B*S*D HBM allocation.
    return pl.pallas_call(
        _add_kernel,
        out_shape=jax.ShapeDtypeStruct((b, s, d), x.dtype),
        grid=(b, pl.cdiv(s, ts)),
        in_specs=[
            pl.BlockSpec((1, ts, d), lambda bi, si: (bi, si, 0)),
            # Constant index along S -> the embedding row stays VMEM-resident.
            pl.BlockSpec((1, 1, d), lambda bi, si: (bi, 0, 0)),
        ],
        out_specs=pl.BlockSpec((1, ts, d), lambda bi, si: (bi, si, 0)),
        compiler_params=pltpu.CompilerParams(
            dimension_semantics=("parallel", "parallel"),
            vmem_limit_bytes=_VMEM_LIMIT_BYTES,
        ),
    )(x, emb3)


def _broadcast_add_rows(x, emb_rows, tb):
    b, d = x.shape
    return pl.pallas_call(
        _add_kernel,
        out_shape=jax.ShapeDtypeStruct((b, d), x.dtype),
        grid=(pl.cdiv(b, tb),),
        in_specs=[
            pl.BlockSpec((tb, d), lambda i: (i, 0)),
            pl.BlockSpec((tb, d), lambda i: (i, 0)),
        ],
        out_specs=pl.BlockSpec((tb, d), lambda i: (i, 0)),
        compiler_params=pltpu.CompilerParams(
            dimension_semantics=("parallel",),
            vmem_limit_bytes=_VMEM_LIMIT_BYTES,
        ),
    )(x, emb_rows)


# ---------------------------------------------------------------------------
# Wrapper with the same forward semantics as the PyTorch module.
# ---------------------------------------------------------------------------
def gaussian_fourier_projection(x, timesteps, fourier_w, dense_w, dense_b,
                                use_time_axis: bool = True):
    """x: (B, S, D) if use_time_axis else (B, D); timesteps: (B,);
    fourier_w: ((D+1)//2,) (already includes the Gaussian `scale`);
    dense_w: (D, D) PyTorch Linear weight (out, in); dense_b: (D,)."""
    d = x.shape[-1]
    b = x.shape[0]
    half = (d + 1) // 2
    assert fourier_w.shape == (half,)

    timesteps = jnp.reshape(timesteps, (-1,)).astype(jnp.float32)
    itemsize = jnp.dtype(x.dtype).itemsize

    # Fold 2*pi into the tiny Fourier weights (free); never pre-scale big x.
    w_scaled = fourier_w.astype(jnp.float32) * (2.0 * math.pi)
    wd_t = dense_w.astype(jnp.float32).T          # nn.Linear computes x @ W.T
    bias = dense_b.astype(jnp.float32).reshape(1, d)

    if d % 2 == 0:
        b_pad = _cdiv(b, 8) * 8                   # sublane-align the tiny batch
        t_pad = jnp.zeros((b_pad, 1), jnp.float32).at[:b, 0].set(timesteps)
        tn = _lane_tile(d, 2 * d * 4, _STAGE1_BUF_BUDGET)
        emb3 = _time_embedding(t_pad, w_scaled.reshape(1, half), wd_t, bias,
                               x.dtype, tn)       # (b_pad, 1, d)
    else:
        # TODO(synk): odd d_model drops one cos column; the embedding is tiny,
        # so leave stage 1 to XLA and keep the HBM-bound add in Pallas.
        proj = timesteps[:, None] * w_scaled[None, :]
        emb = jnp.concatenate([jnp.sin(proj), jnp.cos(proj)], axis=-1)[:, :d]
        emb3 = ((emb @ wd_t) + bias).astype(x.dtype)[:, None, :]   # (b, 1, d)

    if use_time_axis:
        assert x.ndim == 3
        s = x.shape[1]
        # Force >= 2 parallel grid steps when B == 1 so both v7x cores stream.
        ts = _row_tile(s, 4 * d * itemsize, _STAGE2_BUF_BUDGET,
                       cap=1024, min_steps=2 if b == 1 else 1)
        return _broadcast_add_seq(x, emb3, ts)

    # use_time_axis=False: keep x 2D and tile row blocks.
    assert x.ndim == 2
    emb_rows = emb3[:b, 0, :]                     # (b, d), tiny slice (2D path only)
    tb = _row_tile(b, 6 * d * itemsize, _STAGE2_BUF_BUDGET, cap=1024, min_steps=2)
    return _broadcast_add_rows(x, emb_rows, tb)


if __name__ == "__main__":
    key = jax.random.PRNGKey(0)
    B, S, D = 2, 8, 32
    scale = 30.0
    half = (D + 1) // 2

    k1, k2, k3, k4, k5 = jax.random.split(key, 5)
    x = jax.random.normal(k1, (B, S, D), jnp.float32)
    timesteps = jax.random.uniform(k2, (B,), jnp.float32)
    fourier_w = jax.random.normal(k3, (half,), jnp.float32) * scale
    dense_w = jax.random.normal(k4, (D, D), jnp.float32) / math.sqrt(D)
    dense_b = jax.random.normal(k5, (D,), jnp.float32) * 0.01

    fwd = jax.jit(gaussian_fourier_projection, static_argnames=("use_time_axis",))
    out = jax.block_until_ready(fwd(x, timesteps, fourier_w, dense_w, dense_b))

    # Pure-JAX reference mirroring the PyTorch forward.
    proj = timesteps[:, None] * fourier_w[None, :] * 2.0 * np.pi
    emb = jnp.concatenate([jnp.sin(proj), jnp.cos(proj)], axis=-1)[:, :D]
    ref = x + (emb @ dense_w.T + dense_b)[:, None, :]
    np.testing.assert_allclose(np.asarray(out), np.asarray(ref), rtol=2e-2, atol=2e-2)

    # Also exercise the use_time_axis=False (2D) path.
    x2 = jax.random.normal(k1, (B, D), jnp.float32)
    out2 = jax.block_until_ready(
        fwd(x2, timesteps, fourier_w, dense_w, dense_b, use_time_axis=False))
    ref2 = x2 + (emb @ dense_w.T + dense_b)
    np.testing.assert_allclose(np.asarray(out2), np.asarray(ref2), rtol=2e-2, atol=2e-2)

    print("KERNEL_OK")
</pallas_src>

<mosaic_0001>
module attributes {stable_mosaic.version = 11 : i64} {
  func.func @_add_kernel(%arg0: i32, %arg1: i32, %arg2: memref<1x8x32xf32, #tpu.memory_space<vmem>>, %arg3: memref<1x1x32xf32, #tpu.memory_space<vmem>>, %arg4: memref<1x8x32xf32, #tpu.memory_space<vmem>>) attributes {dimension_semantics = [#tpu.dimension_semantics<parallel>, #tpu.dimension_semantics<parallel>], iteration_bounds = array<i64: 2, 1>, scalar_prefetch = 0 : i64, scratch_operands = 0 : i64, tpu.core_type = #tpu.core_type<tc>, window_params = [{transform_indices = @transform_0, window_bounds = array<i64: 1, 8, 32>}, {transform_indices = @transform_1, window_bounds = array<i64: 1, 1, 32>}, {transform_indices = @transform_2, window_bounds = array<i64: 1, 8, 32>}]} {
    %c0 = arith.constant 0 : index
    %c0_0 = arith.constant 0 : index
    %c0_1 = arith.constant 0 : index
    %0 = vector.load %arg2[%c0, %c0_0, %c0_1] : memref<1x8x32xf32, #tpu.memory_space<vmem>>, vector<1x8x32xf32>
    %c0_2 = arith.constant 0 : index
    %c0_3 = arith.constant 0 : index
    %c0_4 = arith.constant 0 : index
    %1 = vector.load %arg3[%c0_2, %c0_3, %c0_4] : memref<1x1x32xf32, #tpu.memory_space<vmem>>, vector<1x1x32xf32>
    %2 = vector.broadcast %1 : vector<1x1x32xf32> to vector<1x8x32xf32>
    %3 = arith.addf %0, %2 : vector<1x8x32xf32>
    %c0_5 = arith.constant 0 : index
    %c0_6 = arith.constant 0 : index
    %c0_7 = arith.constant 0 : index
    %4 = vector.load %arg4[%c0_5, %c0_6, %c0_7] : memref<1x8x32xf32, #tpu.memory_space<vmem>>, vector<1x8x32xf32>
    tpu.vector_store %arg4[%c0_5, %c0_6, %c0_7], %3 {strides = array<i32>} : memref<1x8x32xf32, #tpu.memory_space<vmem>>, vector<1x8x32xf32>,
    return
  }
  func.func @transform_0(%arg0: i32, %arg1: i32) -> (i32, i32, i32) {
    %c0_i32 = arith.constant 0 : i32
    %c0_i32_0 = arith.constant 0 : i32
    return %arg0, %arg1, %c0_i32 : i32, i32, i32
  }
  func.func @transform_1(%arg0: i32, %arg1: i32) -> (i32, i32, i32) {
    %c0_i32 = arith.constant 0 : i32
    %c0_i32_0 = arith.constant 0 : i32
    %c0_i32_1 = arith.constant 0 : i32
    return %arg0, %c0_i32, %c0_i32_0 : i32, i32, i32
  }
  func.func @transform_2(%arg0: i32, %arg1: i32) -> (i32, i32, i32) {
    %c0_i32 = arith.constant 0 : i32
    %c0_i32_0 = arith.constant 0 : i32
    return %arg0, %arg1, %c0_i32 : i32, i32, i32
  }
}

module attributes {stable_mosaic.version = 11 : i64} {
  func.func @_time_emb_kernel(%arg0: i32, %arg1: memref<8x1xf32, #tpu.memory_space<vmem>>, %arg2: memref<1x16xf32, #tpu.memory_space<vmem>>, %arg3: memref<32x32xf32, #tpu.memory_space<vmem>>, %arg4: memref<1x32xf32, #tpu.memory_space<vmem>>, %arg5: memref<8x1x32xf32, #tpu.memory_space<vmem>>, %arg6: memref<8x32xf32, #tpu.memory_space<vmem>>) attributes {dimension_semantics = [#tpu.dimension_semantics<arbitrary>], iteration_bounds = array<i64: 1>, scalar_prefetch = 0 : i64, scratch_operands = 1 : i64, tpu.core_type = #tpu.core_type<tc>, window_params = [{pipeline_mode = #tpu.pipeline_mode<synchronous>, transform_indices = @transform_0, window_bounds = array<i64: 8, 1>}, {pipeline_mode = #tpu.pipeline_mode<synchronous>, transform_indices = @transform_1, window_bounds = array<i64: 1, 16>}, {transform_indices = @transform_2, window_bounds = array<i64: 32, 32>}, {transform_indices = @transform_3, window_bounds = array<i64: 1, 32>}, {transform_indices = @transform_4, window_bounds = array<i64: 8, 1, 32>}]} {
    %c0_i32 = arith.constant 0 : i32
    %0 = arith.cmpi eq, %arg0, %c0_i32 : i32
    %1 = arith.extui %0 : i1 to i32
    %c0_i32_0 = arith.constant 0 : i32
    %2 = arith.cmpi ne, %1, %c0_i32_0 : i32
    scf.if %2 {
      %c0_9 = arith.constant 0 : index
      %c0_10 = arith.constant 0 : index
      %12 = vector.load %arg1[%c0_9, %c0_10] : memref<8x1xf32, #tpu.memory_space<vmem>>, vector<8x1xf32>
      %c0_11 = arith.constant 0 : index
      %c0_12 = arith.constant 0 : index
      %13 = vector.load %arg2[%c0_11, %c0_12] : memref<1x16xf32, #tpu.memory_space<vmem>>, vector<1x16xf32>
      %14 = vector.broadcast %12 : vector<8x1xf32> to vector<8x16xf32>
      %15 = vector.broadcast %13 : vector<1x16xf32> to vector<8x16xf32>
      %16 = arith.mulf %14, %15 : vector<8x16xf32>
      %17 = math.sin %16 : vector<8x16xf32>
      %c0_13 = arith.constant 0 : index
      %c0_14 = arith.constant 0 : index
      %18 = vector.load %arg6[%c0_13, %c0_14] : memref<8x32xf32, #tpu.memory_space<vmem>>, vector<8x16xf32>
      tpu.vector_store %arg6[%c0_13, %c0_14], %17 {strides = array<i32>} : memref<8x32xf32, #tpu.memory_space<vmem>>, vector<8x16xf32>,
      %19 = math.cos %16 : vector<8x16xf32>
      %c0_15 = arith.constant 0 : index
      %c16 = arith.constant 16 : index
      %20 = vector.load %arg6[%c0_15, %c16] : memref<8x32xf32, #tpu.memory_space<vmem>>, vector<8x16xf32>
      tpu.vector_store %arg6[%c0_15, %c16], %19 {strides = array<i32>} : memref<8x32xf32, #tpu.memory_space<vmem>>, vector<8x16xf32>,
    } else {
    }
    %c0 = arith.constant 0 : index
    %c0_1 = arith.constant 0 : index
    %3 = vector.load %arg6[%c0, %c0_1] : memref<8x32xf32, #tpu.memory_space<vmem>>, vector<8x32xf32>
    %c0_2 = arith.constant 0 : index
    %c0_3 = arith.constant 0 : index
    %4 = vector.load %arg3[%c0_2, %c0_3] : memref<32x32xf32, #tpu.memory_space<vmem>>, vector<32x32xf32>
    %cst = arith.constant dense<0.000000e+00> : vector<8x32xf32>
    %5 = tpu.matmul %3, %4, %cst {dimension_numbers = #tpu.dot_dimension_numbers<[1], [0], [0], [1], [0, 0, 1, 1], [], []>} : vector<8x32xf32>, vector<32x32xf32>, vector<8x32xf32> -> vector<8x32xf32>
    %c0_4 = arith.constant 0 : index
    %c0_5 = arith.constant 0 : index
    %6 = vector.load %arg4[%c0_4, %c0_5] : memref<1x32xf32, #tpu.memory_space<vmem>>, vector<1x32xf32>
    %7 = vector.broadcast %6 : vector<1x32xf32> to vector<8x32xf32>
    %8 = arith.addf %5, %7 : vector<8x32xf32>
    %c0_6 = arith.constant 0 : index
    %c0_7 = arith.constant 0 : index
    %c0_8 = arith.constant 0 : index
    %9 = vector.load %arg5[%c0_6, %c0_7, %c0_8] : memref<8x1x32xf32, #tpu.memory_space<vmem>>, vector<8x1x32xf32>
    %10 = vector.shape_cast %9 : vector<8x1x32xf32> to vector<8x32xf32>
    %11 = vector.shape_cast %8 : vector<8x32xf32> to vector<8x1x32xf32>
    tpu.vector_store %arg5[%c0_6, %c0_7, %c0_8], %11 {strides = array<i32>} : memref<8x1x32xf32, #tpu.memory_space<vmem>>, vector<8x1x32xf32>,
    return
  }
  func.func @transform_0(%arg0: i32) -> (i32, i32) {
    %c0_i32 = arith.constant 0 : i32
    %c0_i32_0 = arith.constant 0 : i32
    %c0_i32_1 = arith.constant 0 : i32
    return %c0_i32, %c0_i32_0 : i32, i32
  }
  func.func @transform_1(%arg0: i32) -> (i32, i32) {
    %c0_i32 = arith.constant 0 : i32
    %c0_i32_0 = arith.constant 0 : i32
    %c0_i32_1 = arith.constant 0 : i32
    return %c0_i32, %c0_i32_0 : i32, i32
  }
  func.func @transform_2(%arg0: i32) -> (i32, i32) {
    %c0_i32 = arith.constant 0 : i32
    %c0_i32_0 = arith.constant 0 : i32
    return %c0_i32, %arg0 : i32, i32
  }
  func.func @transform_3(%arg0: i32) -> (i32, i32) {
    %c0_i32 = arith.constant 0 : i32
    %c0_i32_0 = arith.constant 0 : i32
    return %c0_i32, %arg0 : i32, i32
  }
  func.func @transform_4(%arg0: i32) -> (i32, i32, i32) {
    %c0_i32 = arith.constant 0 : i32
    %c0_i32_0 = arith.constant 0 : i32
    %c0_i32_1 = arith.constant 0 : i32
    return %c0_i32, %c0_i32_0, %arg0 : i32, i32, i32
  }
}

</mosaic_0001>

<bundles_post_ra>
// kernel: gaussian_fourier_projection.3
= control target key start
LH: loop header
LB: loop body
LE: loop exit
PB: predicated region body
PF: predicated region fallthrough
CT: control target
= control target key end

     0   :  { %7 = vsyncpa [#allocation3], 0  ;;  %s549_s0 = inlined_call_operand.vmem [shape: f32[2,8,32], index: 0, kind: input, shape index: {}]   ;;  %s550_s1 = inlined_call_operand.vmem [shape: f32[8,1,32], index: 1, kind: input, shape index: {}]   ;;  %s551_s2 = inlined_call_operand.hbm [shape: f32[2,8,32], index: 2, kind: output, shape index: {}]  }
   0x1   :  { %9 = vsyncpa [#allocation3 + $0x1], 0  ;;  %s445_s9 = smov 0   ;;  %s447_s10 = smov 0  }
   0x2   :  { %s449_s11 = smov 0   ;;  %s451_s12 = smov 0  }
   0x3   :  { %s453_s13 = smov 0   ;;  %s455_s14 = smov 0  }
   0x4 LB: > { %s284_s15 = sadd.s32 4294967295, %s427_s14   ;;  %s285_s16 = sadd.s32 4294967294, %s427_s14   ;;  %s427_s14 = sphi %s455_s14, %s15_s14   ;;  %s423_s13 = sphi %s453_s13, %s558_s13   ;;  %s419_s12 = sphi %s451_s12, %s557_s12   ;;  %s415_s11 = sphi %s449_s11, %s556_s11   ;;  %s411_s10 = sphi %s447_s10, %s555_s10   ;;  %s407_s9 = sphi %s445_s9, %s554_s9  }
   0x5   : > { %s27_s17 = sadd.s32 1, %s423_s13  ;;  %s90_s18 = sadd.s32 1, %s415_s11 }
   0x6   : > { %p29_p0 = scmp.ge.s32.totalorder %s27_s17, 2  ;;  %p100_p1 = scmp.ne.s32.totalorder %s415_s11, %s411_s10 }
   0x7   : > { %p101_p2 = scmp.eq.s32.totalorder %s284_s15, 1  ;;  %p106_p3 = scmp.ne.s32.totalorder %s411_s10, %s407_s9 }
   0x8   : > { %s560_s17 = smov (%p29_p0, %s27_s17), 0  ;;  %p107_p5 = scmp.eq.s32.totalorder %s285_s16, 1 }
   0x9   : > { %p485_p4 = por %p101_p2, %p100_p1  ;;  %s85_s20 = ssub.s32 %s423_s13, %s560_s17 }
   0xa   : > { %p288_p6 = scmp.ge.s32.totalorder %s427_s14, 1  ;;  %p88_p7 = scmp.eq.s32.totalorder %s85_s20, 0 }
   0xb   : > { %p492_p8 = por %p107_p5, %p106_p3  ;;  %p141_p9 = scmp.lt.s32.totalorder %s427_s14, 3 }
   0xc   : > { %s498_s22 = scalar_select %p88_p7, %s415_s11, %s90_s18  }
   0xd   : > { %p142_p10 = pnand %p288_p6, %p141_p9 }
   0xe   : > { %s165_s23 = sand.u32 (!%p142_p10), 1, %s411_s10   ;;  %p168_p11 = scmp.lt.s32.totalorder (!%p142_p10), %s419_s12, 1 }
   0xf   : > { %145 = sbr.rel (%p142_p10) target bundleno = 45 (0x2d), region = 28  ;;  %s289_s24 = sshll.u32 (!%p142_p10), %s165_s23, 3 }
  0x10   : > { %p175_p12 = scmp.lt.s32.totalorder (!%p142_p10), %s419_s12, 7  ;;  %s167_s28 = scalar_lea.vmem (!%p142_p10), [#allocation2], %s289_s24 }
  0x11   : > { %s204_s29 = sshll.u32 (!%p142_p10), %s167_s28, 4  ;;  %s293_s8 = sshll.u32 (!%p142_p10), %s419_s12, 7  ;;  %s205_s29 = int_to_ptr.vmem [resolvable:$true] %s204_s29 }
  0x12   : > { %s202_s18 = scalar_lea.hbm (!%p142_p10), %s551_s2, %s293_s8  ;;  %s190_s20 = scalar_lea.sflag (!%p142_p10), [#allocation3], %s165_s23 }
  0x13   : > { %s351_s24 = scalar_lea.vmem (!%p142_p10), %s205_s29, 128 }
  0x14   : > { %s169_s25 = scalar_select %p168_p11, %s419_s12, 1  ;;  %vm187_vm0 = vcmask 261120  }
  0x15   : > { %s176_s26 = scalar_select %p175_p12, %s419_s12, 7 }
  0x16   : > { %s290_s27 = sshll.u32 %s169_s25, 3  ;;  %p352_p13 = scmp.ne.s32.totalorder %s205_s29, %s351_s24 }
  0x17   : > { %s174_s4 = scalar_lea.vmem %s549_s0, %s290_s27  ;;  %s177_s7 = scalar_lea.vmem %s550_s1, %s176_s26 }
  0x18   : > { %v178_v0 = vld [vmem:[%s174_s4] sm:$0xff]  ;;  %p353_p0 = pnand %p352_p13, %p485_p4  ;;  %s429_s25 = smov [#allocation2]  }
  0x19   : > { %v291_v1 = vld [vmem:[%s177_s7] ss:$0 sm:$0xff]  ;;  %s355_s27 = sshll.u32 %s429_s25, 4  ;;  %s356_s27 = int_to_ptr.vmem [resolvable:$false] %s355_s27 }
  0x1a   : > { %v186_v2 = vadd.f32 %v291_v1, %v178_v0  ;;  %p354_p1 = pneg %p353_p0  ;;  %s357_s26 = scalar_lea.vmem %s356_s27, 256 }
  0x1b   : > { %p358_p2 = scmp.lt.s32.totalorder %s205_s29, %s356_s27  ;;  %p359_p3 = scmp.lt.s32.totalorder %s357_s26, %s351_s24 }
  0x1c   : > { %188 = vst.msk [vmem:[%s167_s28] sm:$0xff] %vm187_vm0, %v186_v2 }
  0x1d   : > { %p360_p5 = por %p359_p3, %p358_p2 }
  0x1f   : > { %p361_p6 = pnand %p360_p5, %p354_p1 }
  0x21   : > { %364 = shalt.err (!%p361_p6)
}
  0x22   : > { %s365_s12 = scalar_lea.hbm %s202_s18, 128  ;;  %s369_s30 = scalar_lea.hbm %s551_s2, 256 }
  0x23   : > { %p366_p7 = scmp.ne.s32.totalorder %s202_s18, %s365_s12  ;;  %p370_p11 = scmp.lt.s32.totalorder %s202_s18, %s551_s2 }
  0x24   : > { %p371_p12 = scmp.lt.s32.totalorder %s369_s30, %s365_s12 }
  0x25   : > { %p367_p9 = pnand %p366_p7, %p485_p4 }
  0x26   : > { %p372_p13 = por %p371_p12, %p370_p11 }
  0x27   : > { %p368_p10 = pneg %p367_p9 }
  0x29   : > { %p373_p0 = pnand %p372_p13, %p368_p10 }
  0x2b   : > { %376 = shalt.err (!%p373_p0)
}
  0x2c   : > { %296 = dma.vmem_to_hbm [thread:$0]  (%p485_p4), %s205_s29, 128, %s202_s18, %s190_s20  }
  0x2d PF: > { %p302_p1 = scmp.ge.s32.totalorder %s427_s14, 2  ;;  %s216_s5 = sand.u32 1, %s407_s9  }
  0x2e   : > { %s217_s6 = scalar_lea.sflag [#allocation3], %s216_s5 }
  0x2f   : > { %p299_p2 = pnand %p302_p1, %p492_p8 }
  0x31   : > { %p300_p3 = pneg %p299_p2 }
  0x33   : > { %402 = dma.done.wait (%p300_p3), %s217_s6, 128  }
  0x34   : > { %404 = vsyncadd (%p300_p3), %s217_s6, 4294967168  ;;  %s15_s14 = sadd.s32 1, %s427_s14   ;;  %s554_s9 = smov %s411_s10 }
  0x35   : > { %p12_p5 = scmp.ge.s32.totalorder %s15_s14, 4   ;;  %s555_s10 = smov %s415_s11 }
  0x36   : > { %s556_s11 = smov %s498_s22  ;;  %s557_s12 = smov %s423_s13 }
  0x37   : > { %s558_s13 = smov %s560_s17  ;;  %14 = sbr.rel (!%p12_p5) target bundleno = 4 (0x4), region = 66 }
  0x3c   :  { %222 = vsyncpa [#allocation3], 1 }
  0x3d   :  { %224 = vsyncpa [#allocation3 + $0x1], 1 }

// kernel: gaussian_fourier_projection.2
= control target key start
LH: loop header
LB: loop body
LE: loop exit
PB: predicated region body
PF: predicated region fallthrough
CT: control target
= control target key end

     0   :  { %v454_v0 = vmov 0   ;;  %v455_v15 = vmov 683565275   ;;  %v456_v17 = vmov 2475754826   ;;  %vm462_vm9 = vmmov 0   ;;  %s565_s0 = inlined_call_operand.vmem [shape: f32[8,1], index: 0, kind: input, shape index: {}]   ;;  %s566_s1 = inlined_call_operand.vmem [shape: f32[1,16], index: 1, kind: input, shape index: {}]   ;;  %s567_s2 = inlined_call_operand.vmem [shape: f32[32,32], index: 2, kind: input, shape index: {}]   ;;  %s568_s3 = inlined_call_operand.vmem [shape: f32[1,32], index: 3, kind: input, shape index: {}]   ;;  %s569_s4 = inlined_call_operand.vmem [shape: f32[8,1,32], index: 4, kind: output, shape index: {}]  }
   0x1   :  { %449 = vset.pattern.permute.xlu0 %v454_v0  ;;  %v21_v1 = vld [vmem:[%s565_s0] sm:$0xff]  ;;  %v457_v20 = vmov 2131351028   ;;  %v458_v23 = vmov 2102212464   ;;  %vm139_vm12 = vcmask 130048  }
   0x2   :  { %25 = vperm.xlu0 %449, %v21_v1   ;;  %v407_v2 = vld [vmem:[%s566_s1] ss:$0 sm:$0xff]  ;;  %v459_v26 = vmov 920167782   ;;  %v460_v29 = vmov 1326507024  }
  0x7d   :  { %v26_v3 = vpop.permute.xlu0 %25 }
  0x7e   :  { %v496_v4 = vmul.f32 %v407_v2, %v26_v3 }
  0x80   :  { %v38_v5 = vand.u32 2139095040, %v496_v4  ;;  %v35_v9 = vand.u32 2147483647, %v496_v4  ;;  %vm37_vm7 = vcmp.lt.s32.totalorder %v496_v4, 0 }
  0x82   :  { %v39_v6 = vshrl.u32 %v38_v5, 23  ;;  %v42_v12 = vand.u32 8388607, %v35_v9  ;;  %vm36_vm8 = vcmp.le.f32.partialorder %v35_v9, 0.7853982  ;;  %v252_v9 = vld [vmem:[%s567_s2 + $0x8] sm:$0xff] }
  0x84   :  { %v408_v7 = vadd.s32 4294967169, %v39_v6  ;;  %v43_v31 = vor.u32 8388608, %v42_v12 }
  0x86   :  { %v45_v8 = vadd.s32 1, %v408_v7  ;;  %v83_v45 = vshll.u32 %v43_v31, 8 }
  0x88   :  { %vm46_vm0 = vcmp.gt.s32.totalorder %v45_v8, 0 }
  0x89   :  { %v47_v10 = vsel %vm46_vm0, %v45_v8, 0 }
  0x8a   :  { %v49_v11 = vand.u32 31, %v47_v10  ;;  %v48_v14 = vshrl.u32 %v47_v10, 5 }
  0x8c   :  { %v50_v13 = vsub.s32 32, %v49_v11  ;;  %v52_v16 = vshll.u32 %v455_v15, %v49_v11  ;;  %v55_v18 = vshll.u32 %v456_v17, %v49_v11  ;;  %v58_v22 = vshll.u32 %v457_v20, %v49_v11 }
  0x8d   :  { %v61_v25 = vshll.u32 %v458_v23, %v49_v11  ;;  %v64_v28 = vshll.u32 %v459_v26, %v49_v11  ;;  %vm67_vm1 = vcmp.lt.s32.totalorder %v48_v14, 1  ;;  %vm70_vm2 = vcmp.lt.s32.totalorder %v48_v14, 4 }
  0x8e   :  { %v53_v19 = vshrl.u32 %v456_v17, %v50_v13  ;;  %v56_v21 = vshrl.u32 %v457_v20, %v50_v13  ;;  %v59_v24 = vshrl.u32 %v458_v23, %v50_v13  ;;  %v62_v27 = vshrl.u32 %v459_v26, %v50_v13  ;;  %v254_v26 = vld [vmem:[%s567_s2 + $0x18] sm:$0xff] }
  0x8f   :  { %v65_v30 = vshrl.u32 %v460_v29, %v50_v13  ;;  %v51_v40 = vshrl.u32 %v455_v15, %v50_v13  ;;  %vm69_vm3 = vcmp.lt.s32.totalorder %v48_v14, 3  ;;  %vm68_vm4 = vcmp.lt.s32.totalorder %v48_v14, 2 }
  0x90   :  { %v54_v32 = vor.u32 %v53_v19, %v52_v16  ;;  %v57_v33 = vor.u32 %v56_v21, %v55_v18  ;;  %v60_v34 = vor.u32 %v59_v24, %v58_v22  ;;  %v63_v35 = vor.u32 %v62_v27, %v61_v25  ;;  %v253_v27 = vld [vmem:[%s567_s2 + $0x10] sm:$0xff] }
  0x91   :  { %v66_v36 = vor.u32 %v65_v30, %v64_v28  ;;  %v461_v25 = vmov 0.0   ;;  %v251_v30 = vld [vmem:[%s567_s2] sm:$0xff]  ;;  %s463_s2 = smov 16  }
  0x92   :  { %v72_v37 = vsel %vm70_vm2, %v60_v34, 2102212464  ;;  %v75_v38 = vsel %vm67_vm1, %v54_v32, %v57_v33  ;;  %v79_v39 = vsel %vm67_vm1, %v57_v33, %v60_v34  ;;  %v76_v41 = vsel %vm70_vm2, %v63_v35, 920167782  ;;  %423 = vmatprep.subr.mxu0 %v461_v25  ;;  %431 = vmatprep.mubr.msk.f32.mxu0 %vm462_vm9, %v461_v25 }
  0x93   :  { %v80_v42 = vsel %vm70_vm2, %v66_v36, 1326507024  ;;  %v77_v43 = vsel %vm69_vm3, %v60_v34, %v76_v41  ;;  %v71_v46 = vsel %vm67_vm1, %v51_v40, %v54_v32  ;;  %v73_v47 = vsel %vm69_vm3, %v57_v33, %v72_v37  ;;  %424 = vmatpush3.msra.mxu0 %v254_v26 }
  0x94   :  { %v81_v44 = vsel %vm69_vm3, %v63_v35, %v80_v42  ;;  %v78_v48 = vsel %vm68_vm4, %v75_v38, %v77_v43  ;;  %v74_v54 = vsel %vm68_vm4, %v71_v46, %v73_v47  ;;  %425 = vmatprep.subr.mxu0 %v461_v25  ;;  %vm127_vm1 = vweird.f32 %v496_v4 }
  0x95   :  { %v82_v49 = vsel %vm68_vm4, %v79_v39, %v81_v44  ;;  %v505_v52 = vmul.u32.u64.low %v83_v45, %v78_v48  ;;  %v506_v53 = vmul.u32.u64.high %v83_v45, %v78_v48, %v505_v52  ;;  %v90_v56 = vmul.u32 %v83_v45, %v74_v54  ;;  %426 = vmatpush3.msra.mxu0 %v253_v27 }
  0x96   :  { %v502_v50 = vmul.u32.u64.low %v83_v45, %v82_v49  ;;  %v503_v51 = vmul.u32.u64.high %v83_v45, %v82_v49, %v502_v50  ;;  %427 = vmatprep.subr.mxu0 %v461_v25  ;;  %vm248_vm2 = vcmask 261248   ;;  %vm262_vm3 = vcmask 261120  }
  0x97   :  { %v93_v55 = vadd.s32 1, %v506_v53  ;;  %428 = vmatpush3.msra.mxu0 %v252_v9  ;;  %v464_v45 = vmov 1966171168   ;;  %v341_v47 = vlaneseq  ;;  %vm394_vm4 = vcmask 253952  }
  0x98   :  { %vm92_vm5 = vc.u32 %v503_v51, %v505_v52  ;;  %v91_v5 = vadd.s32 %v505_v52, %v503_v51  ;;  %429 = vmatprep.subr.mxu0 %v461_v25  ;;  %v339_v46 = vunpack.c.l.s4 %v464_v45 }
  0x99   :  { %v94_v57 = vsel %vm92_vm5, %v93_v55, %v506_v53  ;;  %430 = vmatpush3.msra.mxu0 %v251_v30  ;;  %v342_v49 = vshrl.u32 %v341_v47, 7 }
  0x9a   :  { %v95_v58 = vadd.s32 %v94_v57, %v90_v56  ;;  %v340_v48 = vunpack.c.0.s8 %v339_v46 }
  0x9c   :  { %v96_v59 = vadd.s32 536870912, %v95_v58  ;;  %v343_v50 = vsub.s32 %v340_v48, %v342_v49 }
  0x9e   :  { %v97_v60 = vshrl.u32 %v96_v59, 30 }
  0xa0   :  { %v98_v61 = vshll.u32 %v97_v60, 30  ;;  %v121_v19 = vsub.s32 4, %v97_v60 }
  0xa2   :  { %v99_v62 = vsub.s32 %v95_v58, %v98_v61  ;;  %v122_v22 = vsel %vm37_vm7, %v121_v19, %v97_v60 }
  0xa3   :  { %v124_v23 = vsel %vm36_vm8, 0, %v122_v22 }
  0xa4   :  { %v101_v63 = vsub.s32 0, %v99_v62  ;;  %v128_v24 = vadd.s32 3, %v124_v23  ;;  %v234_v29 = vand.u32 3, %v124_v23 }
  0xa6   :  { %v409_v0 = vmin.u32 %v101_v63, %v99_v62  ;;  %v129_v28 = vand.u32 3, %v128_v24  ;;  %vm239_vm11 = vcmp.eq.s32.totalorder %v234_v29, 2  ;;  %vm236_vm14 = vcmp.eq.s32.totalorder %v234_v29, 0 }
  0xa7   :  { %vm235_vm0 = vcmp.lt.s32.totalorder %v234_v29, 2 }
  0xa8   :  { %v103_v1 = vclz %v409_v0  ;;  %vm134_vm10 = vcmp.eq.s32.totalorder %v129_v28, 2  ;;  %vm131_vm13 = vcmp.eq.s32.totalorder %v129_v28, 0  ;;  %vm130_vm15 = vcmp.lt.s32.totalorder %v129_v28, 2 }
  0xaa   :  { %v410_v2 = vadd.s32 4294967294, %v103_v1 }
  0xac   :  { %vm411_vm6 = vcmp.lt.s32.totalorder %v410_v2, 0 }
  0xad   :  { %v106_v3 = vsel %vm411_vm6, 0, %v410_v2 }
  0xae   :  { %v107_v6 = vsub.s32 32, %v106_v3  ;;  %v111_v7 = vsub.s32 4294967266, %v106_v3  ;;  %v108_v8 = vshll.u32 %v99_v62, %v106_v3 }
  0xb0   :  { %v109_v10 = vshrl.u32 %v91_v5, %v107_v6  ;;  %v112_v11 = vadd.s32 127, %v111_v7 }
  0xb2   :  { %v110_v12 = vor.u32 %v109_v10, %v108_v8  ;;  %v113_v13 = vshll.u32 %v112_v11, 23 }
  0xb4   :  { %v114_v14 = vor.u32 4788187, %v113_v13  ;;  %v117_v16 = vcvt.s32.f32 %v110_v12 }
  0xb6   :  { %v115_v15 = vand.u32 2147483647, %v114_v14 }
  0xb8   :  { %v118_v17 = vmul.f32 %v117_v16, %v115_v15 }
  0xba   :  { %v119_v18 = vxor.u32 2147483648, %v118_v17 }
  0xbc   :  { %v120_v20 = vsel %vm37_vm7, %v119_v18, %v118_v17 }
  0xbd   :  { %v123_v21 = vsel %vm36_vm8, %v496_v4, %v120_v20  ;;  %v416_v4 = vld [vmem:[%s568_s3] ss:$0 sm:$0xff] }
  0xbe   :  { %450 = vcosq.f32 %v123_v21 }
  0xbf   :  { %452 = vsinq.f32 %v123_v21 }
  0xcb   :  { %v451_v31 = vpop.eup %450 }
  0xcc   :  { %v453_v32 = vpop.eup %452  ;;  %v135_v33 = vxor.u32 2147483648, %v451_v31 }
  0xcd   :  { %v132_v34 = vxor.u32 2147483648, %v453_v32 }
  0xce   :  { %v241_v35 = vsel %vm239_vm11, %v135_v33, %v453_v32  ;;  %v136_v36 = vsel %vm134_vm10, %v135_v33, %v453_v32 }
  0xcf   :  { %v238_v37 = vsel %vm236_vm14, %v451_v31, %v132_v34  ;;  %v133_v38 = vsel %vm131_vm13, %v451_v31, %v132_v34 }
  0xd0   :  { %v242_v39 = vsel %vm235_vm0, %v238_v37, %v241_v35  ;;  %v137_v40 = vsel %vm130_vm15, %v133_v38, %v136_v36 }
  0xd1   :  { %v243_v41 = vsel %vm127_vm1, nan, %v242_v39  ;;  %v138_v42 = vsel %vm127_vm1, nan, %v137_v40 }
  0xd2   :  { %245 = vrot.lane.b32.xlu0 %v243_v41, %s463_s2  ;;  %140 = vst.msk [vmem:[#allocation2] sm:$0xff] %vm139_vm12, %v138_v42 }
 0x144   :  { %v246_v43 = vpop.permute.xlu0 %245 }
 0x145   :  { %249 = vst.msk [vmem:[#allocation2] sm:$0xff] %vm248_vm2, %v246_v43 }
 0x14c   :  { %v250_v44 = vld [vmem:[#allocation2] sm:$0xff] }
 0x14d   :  { %432 = vmatmul.mubr.msk.f32.vlgmr.msra.gmra.mxu0 %vm262_vm3, %v250_v44 }
 0x20d   :  { %v332_v51 = vpop.f32.mrf.mxu0 }
 0x20e   :  { %v333_v52 = vadd.f32 %v416_v4, %v332_v51 }
 0x20f   :  { %v433_v53 = vpop.f32.mrf.mxu0 }
 0x210   :  { %v337_v54 = vcombine.high %v333_v52, %v333_v52  ;;  %v344_v55 = vrot.slane %v333_v52, %v343_v50 }
 0x212   :  { %v351_v56 = vrot.slane %v337_v54, %v343_v50  ;;  %v352_v57 = vcombine.high %v344_v55, %v344_v55  ;;  %v360_v58 = vrot.slane %v344_v55, %v343_v50 }
 0x214   :  { %v353_v59 = vcombine.high %v351_v56, %v351_v56  ;;  %v367_v60 = vrot.slane %v351_v56, %v343_v50  ;;  %v374_v61 = vrot.slane %v352_v57, %v343_v50  ;;  %v382_v62 = vcombine.high %v360_v58, %v360_v58  ;;  %395 = vst.msk [vmem:[%s569_s4] sm:$0x1] %vm394_vm4, %v360_v58 }
 0x216   :  { %v381_v63 = vrot.slane %v353_v59, %v343_v50  ;;  %v383_v0 = vcombine.high %v367_v60, %v367_v60  ;;  %v384_v1 = vcombine.high %v374_v61, %v374_v61  ;;  %396 = vst.msk [vmem:[%s569_s4 + $0x1] sm:$0x1] %vm394_vm4, %v374_v61  ;;  %397 = vst.msk [vmem:[%s569_s4 + $0x2] sm:$0x1] %vm394_vm4, %v382_v62 }
 0x217   :  { %399 = vst.msk [vmem:[%s569_s4 + $0x4] sm:$0x1] %vm394_vm4, %v367_v60 }
 0x218   :  { %v385_v2 = vcombine.high %v381_v63, %v381_v63  ;;  %398 = vst.msk [vmem:[%s569_s4 + $0x3] sm:$0x1] %vm394_vm4, %v384_v1  ;;  %400 = vst.msk [vmem:[%s569_s4 + $0x5] sm:$0x1] %vm394_vm4, %v381_v63 }
 0x219   :  { %401 = vst.msk [vmem:[%s569_s4 + $0x6] sm:$0x1] %vm394_vm4, %v383_v0 }
 0x21a   :  { %402 = vst.msk [vmem:[%s569_s4 + $0x7] sm:$0x1] %vm394_vm4, %v385_v2 }

</bundles_post_ra>
